<compile_context>
chip_gen: v7x
topology: tpu7x:2x2x1
jax: 0.10.0
libtpu: 0.0.40
codegen_flags: <defaults>
</compile_context>

<pallas_src>
import functools

import jax
import jax.numpy as jnp
import numpy as np
from jax.experimental import pallas as pl
from jax.experimental.pallas import tpu as pltpu


# ----------------------------------------------------------------------------
# Fused kernel: synthetic inner model on all 3 CFG branches + CFG combine.
#
#   Layouts (per grid step), rows = C*pack (sublane-packed channels):
#     z_ref / imgc_ref / imgu_ref / out_ref : (rows, TM)   f32, lanes = packed-HW chunk
#     wb_ref                                : (rows, 2C+2) cols [Wz^T | Wc^T | bias_cond | bias_unc]
#     coef_ref (SMEM)                       : (3,)         [1-img_scale, text_scale, img_scale-text_scale]
#
#   o_cond = tanh(mix(Wz,z) + mix(Wc,img_cond)   + bias_cond)
#   o_img  = tanh(mix(Wz,z) + mix(Wc,img_cond)   + bias_unc)
#   o_unc  = tanh(mix(Wz,z) + mix(Wc,img_uncond) + bias_unc)
#   out    = (1-si)*o_unc + st*o_cond + (si-st)*o_img   ( == o_unc + st*(o_cond-o_img) + si*(o_img-o_unc) )
# ----------------------------------------------------------------------------
def _cfg_fused_kernel(coef_ref, wb_ref, z_ref, imgc_ref, imgu_ref, out_ref, *, c, pack):
    z = z_ref[...]                          # (rows, TM)
    ic = imgc_ref[...]                      # (rows, TM)
    iu = imgu_ref[...]                      # (rows, TM)
    wb = wb_ref[...]                        # (rows, 2C+2)

    def tiled_slab(x, k):
        # channel-k packed sub-rows replicated to all output rows:
        #   result[j*pack + s, :] = x[k*pack + s, :]
        slab = x[k * pack:(k + 1) * pack, :]
        if c == 1:
            return slab
        return jnp.concatenate([slab] * c, axis=0)

    common = mc = mu = None
    for k in range(c):                      # static unroll; C is the tiny latent channel count
        wz_col = wb[:, k:k + 1]             # Wz[k, j] duplicated over the pack sub-rows
        wc_col = wb[:, c + k:c + k + 1]     # shared by BOTH concat-image mixes
        zs = tiled_slab(z, k)
        cs = tiled_slab(ic, k)
        us = tiled_slab(iu, k)
        if k == 0:
            common = wz_col * zs
            mc = wc_col * cs
            mu = wc_col * us
        else:
            common = common + wz_col * zs
            mc = mc + wc_col * cs
            mu = mu + wc_col * us

    b_cond = wb[:, 2 * c:2 * c + 1]
    b_unc = wb[:, 2 * c + 1:2 * c + 2]

    zi_cond = common + mc                   # hoisted, shared by o_cond and o_img
    o_cond = jnp.tanh(zi_cond + b_cond)     # branch 0: cond image,   cond ctx
    o_img = jnp.tanh(zi_cond + b_unc)       # branch 1: cond image,   uncond ctx
    o_unc = jnp.tanh(common + mu + b_unc)   # branch 2: uncond image, uncond ctx

    out_ref[...] = (coef_ref[0] * o_unc + coef_ref[1] * o_cond
                    + coef_ref[2] * o_img).astype(out_ref.dtype)


# ----------------------------------------------------------------------------
# Wrapper helpers
# ----------------------------------------------------------------------------
def _tensorcores_per_chip():
    """Best-effort TensorCore-per-chip count (v5e/v6e -> 1; v3/v4/v5p/v7x -> 2)."""
    try:
        kind = jax.devices()[0].device_kind.lower()
    except Exception:
        return 1
    if any(t in kind for t in ("v5e", "v5 lite", "v5lite", "v6e", "v6 lite", "v6lite")):
        return 1
    if any(t in kind for t in ("v3", "v4", "v5p", "v7", "7x")):
        return 2
    return 1


def _plan_lane_tiles(lanes, n_tensorcores):
    """Pick (lane tile, #tiles).

    Tile is a multiple of 128.  Single-TC chips get ONE tile (grid is a serial loop there,
    extra steps are pure overhead); multi-TC chips get an even tile count so the parallel
    grid axis shards evenly.  Tile capped at 16K lanes: 8 sublanes * 16384 * 4B = 512 KiB
    per operand block, 4 streamed operands * 2 buffers = 4 MiB, well under scoped VMEM.
    """
    cap = 16384
    multi = n_tensorcores >= 2
    n = 2 if (multi and lanes > 128) else 1
    step = 2 if multi else 1
    tile = lambda nt: ((lanes + nt - 1) // nt + 127) // 128 * 128
    while tile(n) > cap:
        n += step
    return tile(n), n


# ----------------------------------------------------------------------------
# Wrapper
# ----------------------------------------------------------------------------
def cfg_denoise_pallas(z, sigma, cond, uncond, text_cfg_scale, image_cfg_scale, params):
    wz, wc, wctx, b = params
    n, c, h, w = z.shape
    assert n == 1, "CFGDenoiser assumes batch size 1 (PyTorch module's '1 ... -> n ...')"
    hw = h * w

    # sublane packing: split each channel's HW into `pack` sublane rows so f32 vregs are full
    pack = 8 // c if (c < 8 and 8 % c == 0) else 1
    rows = c * pack

    lanes_needed = -(-hw // pack)
    tm, n_tiles = _plan_lane_tiles(lanes_needed, _tensorcores_per_chip())
    lanes_pad = tm * n_tiles
    hw_pad = lanes_pad * pack

    def to_packed(x_nchw):
        flat = x_nchw.reshape(c, hw).astype(jnp.float32)      # pure reshape of NCHW (batch 1)
        if hw_pad != hw:
            flat = jnp.pad(flat, ((0, 0), (0, hw_pad - hw)))  # lane-dense padding, no masked stores
        return flat.reshape(rows, lanes_pad)                  # channel-major row split

    z_p = to_packed(z)
    imgc_p = to_packed(cond['c_concat'][0])
    imgu_p = to_packed(uncond['c_concat'][0])

    # grid-invariant per-branch bias, hoisted: mean_t(ctx @ Wctx) + sigma * b
    ctx_cond = cond['c_crossattn'][0][0]                      # (T, D)
    ctx_unc = uncond['c_crossattn'][0][0]                     # (T, D)
    sig_b = sigma[0] * b[0]                                   # (C,)
    bias_cond = jnp.mean(ctx_cond @ wctx, axis=0) + sig_b     # (C,)
    bias_unc = jnp.mean(ctx_unc @ wctx, axis=0) + sig_b       # (C,)

    # single tiny resident operand: [Wz^T | Wc^T | bias_cond | bias_unc], rows duplicated pack-x
    wb = jnp.concatenate(
        [jnp.repeat(jnp.transpose(wz), pack, axis=0),
         jnp.repeat(jnp.transpose(wc), pack, axis=0),
         jnp.repeat(bias_cond, pack)[:, None],
         jnp.repeat(bias_unc, pack)[:, None]], axis=1).astype(jnp.float32)   # (rows, 2C+2)

    # CFG combine coefficients (SMEM): out = (1-si)*o_unc + st*o_cond + (si-st)*o_img
    st = jnp.asarray(text_cfg_scale, jnp.float32)
    si = jnp.asarray(image_cfg_scale, jnp.float32)
    coef = jnp.stack([1.0 - si, st, si - st])

    kernel = functools.partial(_cfg_fused_kernel, c=c, pack=pack)

    res_p = pl.pallas_call(
        kernel,
        out_shape=jax.ShapeDtypeStruct((rows, lanes_pad), jnp.float32),
        grid=(n_tiles,),
        in_specs=[
            pl.BlockSpec(memory_space=pltpu.MemorySpace.SMEM),      # coef (3,)
            pl.BlockSpec((rows, 2 * c + 2), lambda i: (0, 0)),      # weights + biases (resident)
            pl.BlockSpec((rows, tm), lambda i: (0, i)),             # z (loaded once, shared 3x)
            pl.BlockSpec((rows, tm), lambda i: (0, i)),             # cond concat image
            pl.BlockSpec((rows, tm), lambda i: (0, i)),             # uncond concat image
        ],
        out_specs=pl.BlockSpec((rows, tm), lambda i: (0, i)),
        compiler_params=pltpu.CompilerParams(
            dimension_semantics=("parallel",)),
    )(coef, wb, z_p, imgc_p, imgu_p)

    # unpack: (rows, lanes_pad) -> (C, hw_pad) -> drop padding -> NCHW, batch 1 (pure reshapes)
    res = res_p.reshape(c, hw_pad)
    if hw_pad != hw:
        res = res[:, :hw]
    return res.reshape(1, c, h, w)


class CFGDenoiserPallas:
    """JAX/Pallas port of CFGDenoiser.forward (synthetic inner model)."""

    def __init__(self, params):
        self.params = params

    def __call__(self, z, sigma, cond, uncond, text_cfg_scale, image_cfg_scale):
        return cfg_denoise_pallas(z, sigma, cond, uncond,
                                  text_cfg_scale, image_cfg_scale, self.params)


# ----------------------------------------------------------------------------
# Pure-JAX reference (mirrors the PyTorch module structure) for verification.
# ----------------------------------------------------------------------------
def _reference(z, sigma, cond, uncond, t_scale, i_scale, params):
    wz, wc, wctx, b = params
    cfg_z = jnp.concatenate([z, z, z], 0)
    cfg_sigma = jnp.concatenate([sigma, sigma, sigma], 0)
    cfg_ctx = jnp.concatenate(
        [cond['c_crossattn'][0], uncond['c_crossattn'][0], uncond['c_crossattn'][0]], 0)
    cfg_img = jnp.concatenate(
        [cond['c_concat'][0], cond['c_concat'][0], uncond['c_concat'][0]], 0)
    n, c, h, w = cfg_z.shape
    zr = jnp.transpose(cfg_z, (0, 2, 3, 1)).reshape(n, h * w, c)
    ir = jnp.transpose(cfg_img, (0, 2, 3, 1)).reshape(n, h * w, c)
    ctxp = jnp.mean(cfg_ctx @ wctx, axis=1, keepdims=True)
    out = jnp.tanh(zr @ wz + ir @ wc + ctxp + cfg_sigma[:, None, None] * b[None])
    oc, oi, ou = out[0], out[1], out[2]
    res = ou + t_scale * (oc - oi) + i_scale * (oi - ou)
    return jnp.transpose(res.reshape(h, w, c), (2, 0, 1))[None]


if __name__ == "__main__":
    key = jax.random.PRNGKey(0)
    k = jax.random.split(key, 12)

    C, T, D = 4, 8, 32        # latent channels / ctx tokens / ctx dim

    # deterministic synthetic inner-model parameters
    wz = jax.random.normal(k[0], (C, C), jnp.float32) * 0.3
    wc = jax.random.normal(k[1], (C, C), jnp.float32) * 0.3
    wctx = jax.random.normal(k[2], (D, C), jnp.float32) * 0.1
    b = jax.random.normal(k[3], (1, C), jnp.float32) * 0.05
    params = (wz, wc, wctx, b)
    denoiser = CFGDenoiserPallas(params)

    def run_case(kk, h, w, t_scale, i_scale):
        z = jax.random.normal(kk[0], (1, C, h, w), jnp.float32)
        sigma = jnp.abs(jax.random.normal(kk[1], (1,), jnp.float32)) + 0.1
        cond = {'c_crossattn': [jax.random.normal(kk[2], (1, T, D), jnp.float32)],
                'c_concat': [jax.random.normal(kk[3], (1, C, h, w), jnp.float32)]}
        uncond = {'c_crossattn': [jnp.zeros((1, T, D), jnp.float32)],
                  'c_concat': [jax.random.normal(kk[4], (1, C, h, w), jnp.float32) * 0.5]}
        out = jax.block_until_ready(denoiser(z, sigma, cond, uncond, t_scale, i_scale))
        ref = _reference(z, sigma, cond, uncond, t_scale, i_scale, params)
        assert out.shape == (1, C, h, w), out.shape
        np.testing.assert_allclose(np.asarray(out), np.asarray(ref), rtol=1e-5, atol=1e-5)

    # lane-aligned case: HW = 256 -> 128 packed lanes (one full-vreg tile)
    run_case(k[4:9], 16, 16, 7.5, 1.5)
    # non-128-multiple case exercising the pad / unpad path: HW = 100
    run_case(k[7:12], 10, 10, 6.0, 1.2)

    print("KERNEL_OK")
</pallas_src>

<mosaic_0001>
module attributes {stable_mosaic.version = 11 : i64} {
  func.func @_cfg_fused_kernel(%arg0: i32, %arg1: memref<3xf32, #tpu.memory_space<smem>>, %arg2: memref<8x10xf32, #tpu.memory_space<vmem>>, %arg3: memref<8x128xf32, #tpu.memory_space<vmem>>, %arg4: memref<8x128xf32, #tpu.memory_space<vmem>>, %arg5: memref<8x128xf32, #tpu.memory_space<vmem>>, %arg6: memref<8x128xf32, #tpu.memory_space<vmem>>) attributes {dimension_semantics = [#tpu.dimension_semantics<parallel>], iteration_bounds = array<i64: 1>, scalar_prefetch = 0 : i64, scratch_operands = 0 : i64, tpu.core_type = #tpu.core_type<tc>, window_params = [{transform_indices = @transform_0, window_bounds = array<i64: 3>}, {pipeline_mode = #tpu.pipeline_mode<synchronous>, transform_indices = @transform_1, window_bounds = array<i64: 8, 10>}, {transform_indices = @transform_2, window_bounds = array<i64: 8, 128>}, {transform_indices = @transform_3, window_bounds = array<i64: 8, 128>}, {transform_indices = @transform_4, window_bounds = array<i64: 8, 128>}, {transform_indices = @transform_5, window_bounds = array<i64: 8, 128>}]} {
    %c0 = arith.constant 0 : index
    %c0_0 = arith.constant 0 : index
    %0 = vector.load %arg3[%c0, %c0_0] : memref<8x128xf32, #tpu.memory_space<vmem>>, vector<8x128xf32>
    %c0_1 = arith.constant 0 : index
    %c0_2 = arith.constant 0 : index
    %1 = vector.load %arg4[%c0_1, %c0_2] : memref<8x128xf32, #tpu.memory_space<vmem>>, vector<8x128xf32>
    %c0_3 = arith.constant 0 : index
    %c0_4 = arith.constant 0 : index
    %2 = vector.load %arg5[%c0_3, %c0_4] : memref<8x128xf32, #tpu.memory_space<vmem>>, vector<8x128xf32>
    %c0_5 = arith.constant 0 : index
    %c0_6 = arith.constant 0 : index
    %3 = vector.load %arg2[%c0_5, %c0_6] : memref<8x10xf32, #tpu.memory_space<vmem>>, vector<8x10xf32>
    %4 = vector.extract_strided_slice %3 {offsets = [0, 0], sizes = [8, 1], strides = [1, 1]} : vector<8x10xf32> to vector<8x1xf32>
    %5 = vector.extract_strided_slice %3 {offsets = [0, 4], sizes = [8, 1], strides = [1, 1]} : vector<8x10xf32> to vector<8x1xf32>
    %6 = vector.extract_strided_slice %0 {offsets = [0, 0], sizes = [2, 128], strides = [1, 1]} : vector<8x128xf32> to vector<2x128xf32>
    %7 = tpu.concatenate %6, %6, %6, %6 in 0 : vector<2x128xf32>, vector<2x128xf32>, vector<2x128xf32>, vector<2x128xf32> -> vector<8x128xf32>
    %8 = vector.extract_strided_slice %1 {offsets = [0, 0], sizes = [2, 128], strides = [1, 1]} : vector<8x128xf32> to vector<2x128xf32>
    %9 = tpu.concatenate %8, %8, %8, %8 in 0 : vector<2x128xf32>, vector<2x128xf32>, vector<2x128xf32>, vector<2x128xf32> -> vector<8x128xf32>
    %10 = vector.extract_strided_slice %2 {offsets = [0, 0], sizes = [2, 128], strides = [1, 1]} : vector<8x128xf32> to vector<2x128xf32>
    %11 = tpu.concatenate %10, %10, %10, %10 in 0 : vector<2x128xf32>, vector<2x128xf32>, vector<2x128xf32>, vector<2x128xf32> -> vector<8x128xf32>
    %12 = vector.broadcast %4 : vector<8x1xf32> to vector<8x128xf32>
    %13 = arith.mulf %12, %7 : vector<8x128xf32>
    %14 = vector.broadcast %5 : vector<8x1xf32> to vector<8x128xf32>
    %15 = arith.mulf %14, %9 : vector<8x128xf32>
    %16 = vector.broadcast %5 : vector<8x1xf32> to vector<8x128xf32>
    %17 = arith.mulf %16, %11 : vector<8x128xf32>
    %18 = vector.extract_strided_slice %3 {offsets = [0, 1], sizes = [8, 1], strides = [1, 1]} : vector<8x10xf32> to vector<8x1xf32>
    %19 = vector.extract_strided_slice %3 {offsets = [0, 5], sizes = [8, 1], strides = [1, 1]} : vector<8x10xf32> to vector<8x1xf32>
    %20 = vector.extract_strided_slice %0 {offsets = [2, 0], sizes = [2, 128], strides = [1, 1]} : vector<8x128xf32> to vector<2x128xf32>
    %21 = tpu.concatenate %20, %20, %20, %20 in 0 : vector<2x128xf32>, vector<2x128xf32>, vector<2x128xf32>, vector<2x128xf32> -> vector<8x128xf32>
    %22 = vector.extract_strided_slice %1 {offsets = [2, 0], sizes = [2, 128], strides = [1, 1]} : vector<8x128xf32> to vector<2x128xf32>
    %23 = tpu.concatenate %22, %22, %22, %22 in 0 : vector<2x128xf32>, vector<2x128xf32>, vector<2x128xf32>, vector<2x128xf32> -> vector<8x128xf32>
    %24 = vector.extract_strided_slice %2 {offsets = [2, 0], sizes = [2, 128], strides = [1, 1]} : vector<8x128xf32> to vector<2x128xf32>
    %25 = tpu.concatenate %24, %24, %24, %24 in 0 : vector<2x128xf32>, vector<2x128xf32>, vector<2x128xf32>, vector<2x128xf32> -> vector<8x128xf32>
    %26 = vector.broadcast %18 : vector<8x1xf32> to vector<8x128xf32>
    %27 = arith.mulf %26, %21 : vector<8x128xf32>
    %28 = arith.addf %13, %27 : vector<8x128xf32>
    %29 = vector.broadcast %19 : vector<8x1xf32> to vector<8x128xf32>
    %30 = arith.mulf %29, %23 : vector<8x128xf32>
    %31 = arith.addf %15, %30 : vector<8x128xf32>
    %32 = vector.broadcast %19 : vector<8x1xf32> to vector<8x128xf32>
    %33 = arith.mulf %32, %25 : vector<8x128xf32>
    %34 = arith.addf %17, %33 : vector<8x128xf32>
    %35 = vector.extract_strided_slice %3 {offsets = [0, 2], sizes = [8, 1], strides = [1, 1]} : vector<8x10xf32> to vector<8x1xf32>
    %36 = vector.extract_strided_slice %3 {offsets = [0, 6], sizes = [8, 1], strides = [1, 1]} : vector<8x10xf32> to vector<8x1xf32>
    %37 = vector.extract_strided_slice %0 {offsets = [4, 0], sizes = [2, 128], strides = [1, 1]} : vector<8x128xf32> to vector<2x128xf32>
    %38 = tpu.concatenate %37, %37, %37, %37 in 0 : vector<2x128xf32>, vector<2x128xf32>, vector<2x128xf32>, vector<2x128xf32> -> vector<8x128xf32>
    %39 = vector.extract_strided_slice %1 {offsets = [4, 0], sizes = [2, 128], strides = [1, 1]} : vector<8x128xf32> to vector<2x128xf32>
    %40 = tpu.concatenate %39, %39, %39, %39 in 0 : vector<2x128xf32>, vector<2x128xf32>, vector<2x128xf32>, vector<2x128xf32> -> vector<8x128xf32>
    %41 = vector.extract_strided_slice %2 {offsets = [4, 0], sizes = [2, 128], strides = [1, 1]} : vector<8x128xf32> to vector<2x128xf32>
    %42 = tpu.concatenate %41, %41, %41, %41 in 0 : vector<2x128xf32>, vector<2x128xf32>, vector<2x128xf32>, vector<2x128xf32> -> vector<8x128xf32>
    %43 = vector.broadcast %35 : vector<8x1xf32> to vector<8x128xf32>
    %44 = arith.mulf %43, %38 : vector<8x128xf32>
    %45 = arith.addf %28, %44 : vector<8x128xf32>
    %46 = vector.broadcast %36 : vector<8x1xf32> to vector<8x128xf32>
    %47 = arith.mulf %46, %40 : vector<8x128xf32>
    %48 = arith.addf %31, %47 : vector<8x128xf32>
    %49 = vector.broadcast %36 : vector<8x1xf32> to vector<8x128xf32>
    %50 = arith.mulf %49, %42 : vector<8x128xf32>
    %51 = arith.addf %34, %50 : vector<8x128xf32>
    %52 = vector.extract_strided_slice %3 {offsets = [0, 3], sizes = [8, 1], strides = [1, 1]} : vector<8x10xf32> to vector<8x1xf32>
    %53 = vector.extract_strided_slice %3 {offsets = [0, 7], sizes = [8, 1], strides = [1, 1]} : vector<8x10xf32> to vector<8x1xf32>
    %54 = vector.extract_strided_slice %0 {offsets = [6, 0], sizes = [2, 128], strides = [1, 1]} : vector<8x128xf32> to vector<2x128xf32>
    %55 = tpu.concatenate %54, %54, %54, %54 in 0 : vector<2x128xf32>, vector<2x128xf32>, vector<2x128xf32>, vector<2x128xf32> -> vector<8x128xf32>
    %56 = vector.extract_strided_slice %1 {offsets = [6, 0], sizes = [2, 128], strides = [1, 1]} : vector<8x128xf32> to vector<2x128xf32>
    %57 = tpu.concatenate %56, %56, %56, %56 in 0 : vector<2x128xf32>, vector<2x128xf32>, vector<2x128xf32>, vector<2x128xf32> -> vector<8x128xf32>
    %58 = vector.extract_strided_slice %2 {offsets = [6, 0], sizes = [2, 128], strides = [1, 1]} : vector<8x128xf32> to vector<2x128xf32>
    %59 = tpu.concatenate %58, %58, %58, %58 in 0 : vector<2x128xf32>, vector<2x128xf32>, vector<2x128xf32>, vector<2x128xf32> -> vector<8x128xf32>
    %60 = vector.broadcast %52 : vector<8x1xf32> to vector<8x128xf32>
    %61 = arith.mulf %60, %55 : vector<8x128xf32>
    %62 = arith.addf %45, %61 : vector<8x128xf32>
    %63 = vector.broadcast %53 : vector<8x1xf32> to vector<8x128xf32>
    %64 = arith.mulf %63, %57 : vector<8x128xf32>
    %65 = arith.addf %48, %64 : vector<8x128xf32>
    %66 = vector.broadcast %53 : vector<8x1xf32> to vector<8x128xf32>
    %67 = arith.mulf %66, %59 : vector<8x128xf32>
    %68 = arith.addf %51, %67 : vector<8x128xf32>
    %69 = vector.extract_strided_slice %3 {offsets = [0, 8], sizes = [8, 1], strides = [1, 1]} : vector<8x10xf32> to vector<8x1xf32>
    %70 = vector.extract_strided_slice %3 {offsets = [0, 9], sizes = [8, 1], strides = [1, 1]} : vector<8x10xf32> to vector<8x1xf32>
    %71 = arith.addf %62, %65 : vector<8x128xf32>
    %72 = vector.broadcast %69 : vector<8x1xf32> to vector<8x128xf32>
    %73 = arith.addf %71, %72 : vector<8x128xf32>
    %74 = math.tanh %73 : vector<8x128xf32>
    %75 = vector.broadcast %70 : vector<8x1xf32> to vector<8x128xf32>
    %76 = arith.addf %71, %75 : vector<8x128xf32>
    %77 = math.tanh %76 : vector<8x128xf32>
    %78 = arith.addf %62, %68 : vector<8x128xf32>
    %79 = vector.broadcast %70 : vector<8x1xf32> to vector<8x128xf32>
    %80 = arith.addf %78, %79 : vector<8x128xf32>
    %81 = math.tanh %80 : vector<8x128xf32>
    %c0_7 = arith.constant 0 : index
    %82 = memref.load %arg1[%c0_7] : memref<3xf32, #tpu.memory_space<smem>>
    %83 = vector.broadcast %82 : f32 to vector<8x128xf32>
    %84 = arith.mulf %83, %81 : vector<8x128xf32>
    %c1 = arith.constant 1 : index
    %85 = memref.load %arg1[%c1] : memref<3xf32, #tpu.memory_space<smem>>
    %86 = vector.broadcast %85 : f32 to vector<8x128xf32>
    %87 = arith.mulf %86, %74 : vector<8x128xf32>
    %88 = arith.addf %84, %87 : vector<8x128xf32>
    %c2 = arith.constant 2 : index
    %89 = memref.load %arg1[%c2] : memref<3xf32, #tpu.memory_space<smem>>
    %90 = vector.broadcast %89 : f32 to vector<8x128xf32>
    %91 = arith.mulf %90, %77 : vector<8x128xf32>
    %92 = arith.addf %88, %91 : vector<8x128xf32>
    %c0_8 = arith.constant 0 : index
    %c0_9 = arith.constant 0 : index
    %93 = vector.load %arg6[%c0_8, %c0_9] : memref<8x128xf32, #tpu.memory_space<vmem>>, vector<8x128xf32>
    tpu.vector_store %arg6[%c0_8, %c0_9], %92 {strides = array<i32>} : memref<8x128xf32, #tpu.memory_space<vmem>>, vector<8x128xf32>,
    return
  }
  func.func @transform_0(%arg0: i32) -> i32 {
    %c0_i32 = arith.constant 0 : i32
    %c0_i32_0 = arith.constant 0 : i32
    return %c0_i32 : i32
  }
  func.func @transform_1(%arg0: i32) -> (i32, i32) {
    %c0_i32 = arith.constant 0 : i32
    %c0_i32_0 = arith.constant 0 : i32
    %c0_i32_1 = arith.constant 0 : i32
    return %c0_i32, %c0_i32_0 : i32, i32
  }
  func.func @transform_2(%arg0: i32) -> (i32, i32) {
    %c0_i32 = arith.constant 0 : i32
    %c0_i32_0 = arith.constant 0 : i32
    return %c0_i32, %arg0 : i32, i32
  }
  func.func @transform_3(%arg0: i32) -> (i32, i32) {
    %c0_i32 = arith.constant 0 : i32
    %c0_i32_0 = arith.constant 0 : i32
    return %c0_i32, %arg0 : i32, i32
  }
  func.func @transform_4(%arg0: i32) -> (i32, i32) {
    %c0_i32 = arith.constant 0 : i32
    %c0_i32_0 = arith.constant 0 : i32
    return %c0_i32, %arg0 : i32, i32
  }
  func.func @transform_5(%arg0: i32) -> (i32, i32) {
    %c0_i32 = arith.constant 0 : i32
    %c0_i32_0 = arith.constant 0 : i32
    return %c0_i32, %arg0 : i32, i32
  }
}

</mosaic_0001>

<bundles_post_ra>
// kernel: tpu_custom_call.1
= control target key start
LH: loop header
LB: loop body
LE: loop exit
PB: predicated region body
PF: predicated region fallthrough
CT: control target
= control target key end

     0   :  { %10 = vsyncpa [#allocation5], 0  ;;  %s541_s0 = inlined_call_operand.hbm [shape: f32[3], index: 0, kind: input, shape index: {}]   ;;  %s542_s1 = inlined_call_operand.hbm [shape: f32[8,10], index: 1, kind: input, shape index: {}]   ;;  %s543_s2 = inlined_call_operand.hbm [shape: f32[8,128], index: 2, kind: input, shape index: {}]   ;;  %s544_s3 = inlined_call_operand.vmem [shape: f32[8,128], index: 3, kind: input, shape index: {}]   ;;  %s545_s4 = inlined_call_operand.hbm [shape: f32[8,128], index: 4, kind: input, shape index: {}]   ;;  %s546_s5 = inlined_call_operand.hbm [shape: f32[8,128], index: 5, kind: output, shape index: {}]  }
   0x1   :  { %11 = vsyncpa [#allocation3], 0 }
   0x2   :  { %12 = vsyncpa [#allocation8], 0 }
   0x3   :  { %13 = vsyncpa [#allocation4], 0  ;;  %s370_s18 = smov [#allocation7]   ;;  %s371_s20 = smov [#allocation6]  }
   0x4   :  { %s38_s19 = sshll.u32 %s370_s18, 4  ;;  %s28_s21 = sshll.u32 %s371_s20, 4  ;;  %s39_s19 = int_to_ptr.vmem [resolvable:$true] %s38_s19  ;;  %s29_s21 = int_to_ptr.vmem [resolvable:$true] %s28_s21 }
   0x5   :  { %s264_s24 = scalar_lea.hbm %s543_s2, 128 }
   0x6   :  { %p265_p0 = scmp.ne.s32.totalorder %s543_s2, %s264_s24  ;;  %p268_p1 = scmp.lt.u32.totalorder %s264_s24, %s543_s2 }
   0x8   :  { %p270_p2 = pnand %p268_p1, %p265_p0 }
   0xa   :  { %273 = shalt.err (!%p270_p2)
}
   0xb   :  { %s274_s29 = scalar_lea.vmem %s39_s19, 128  ;;  %p279_p4 = scmp.lt.s32.totalorder %s39_s19, %s39_s19 }
   0xc   :  { %p275_p3 = scmp.ne.s32.totalorder %s39_s19, %s274_s29  ;;  %p280_p5 = scmp.lt.s32.totalorder %s274_s29, %s274_s29 }
   0xe   :  { %p281_p6 = por %p280_p5, %p279_p4 }
  0x10   :  { %p282_p7 = pnand %p281_p6, %p275_p3 }
  0x12   :  { %285 = shalt.err (!%p282_p7)
}
  0x13   :  { %41 = dma.hbm_to_vmem [thread:$0]  %s543_s2, 128, %s39_s19, [#allocation8]  }
  0x14   :  { %s286_s9 = scalar_lea.hbm %s541_s0, 16 }
  0x15   :  { %p287_p8 = scmp.ne.s32.totalorder %s541_s0, %s286_s9  ;;  %p290_p9 = scmp.lt.u32.totalorder %s286_s9, %s541_s0 }
  0x17   :  { %p292_p10 = pnand %p290_p9, %p287_p8 }
  0x19   :  { %295 = shalt.err (!%p292_p10)
}
  0x1a   :  { %s372_s14 = smov [#allocation2]   ;;  %s296_s18 = scalar_lea.hbm %s542_s1, 128 }
  0x1b   :  { %21 = dma.hbm_to_smem %s541_s0, 16, %s372_s14, [#allocation5]  }
  0x1c   :  { %p297_p11 = scmp.ne.s32.totalorder %s542_s1, %s296_s18  ;;  %p300_p12 = scmp.lt.u32.totalorder %s296_s18, %s542_s1 }
  0x1e   :  { %p302_p13 = pnand %p300_p12, %p297_p11 }
  0x20   :  { %305 = shalt.err (!%p302_p13)
}
  0x21   :  { %s306_s24 = scalar_lea.vmem %s29_s21, 128  ;;  %p311_p1 = scmp.lt.s32.totalorder %s29_s21, %s29_s21 }
  0x22   :  { %p307_p0 = scmp.ne.s32.totalorder %s29_s21, %s306_s24  ;;  %p312_p2 = scmp.lt.s32.totalorder %s306_s24, %s306_s24 }
  0x24   :  { %p313_p3 = por %p312_p2, %p311_p1 }
  0x26   :  { %p314_p4 = pnand %p313_p3, %p307_p0 }
  0x28   :  { %317 = shalt.err (!%p314_p4)
}
  0x29   :  { %31 = dma.hbm_to_vmem [thread:$0]  %s542_s1, 128, %s29_s21, [#allocation3]  }
  0x2a   :  { %s373_s26 = smov [#allocation9]   ;;  %s318_s30 = scalar_lea.hbm %s545_s4, 128 }
  0x2b   :  { %s50_s27 = sshll.u32 %s373_s26, 4  ;;  %p319_p5 = scmp.ne.s32.totalorder %s545_s4, %s318_s30  ;;  %s51_s27 = int_to_ptr.vmem [resolvable:$true] %s50_s27 }
  0x2c   :  { %p322_p6 = scmp.lt.u32.totalorder %s318_s30, %s545_s4 }
  0x2e   :  { %p324_p7 = pnand %p322_p6, %p319_p5 }
  0x30   :  { %327 = shalt.err (!%p324_p7)
}
  0x31   :  { %s328_s10 = scalar_lea.vmem %s51_s27, 128  ;;  %p333_p9 = scmp.lt.s32.totalorder %s51_s27, %s51_s27 }
  0x32   :  { %p329_p8 = scmp.ne.s32.totalorder %s51_s27, %s328_s10  ;;  %p334_p10 = scmp.lt.s32.totalorder %s328_s10, %s328_s10 }
  0x34   :  { %p335_p11 = por %p334_p10, %p333_p9 }
  0x36   :  { %p336_p12 = pnand %p335_p11, %p329_p8 }
  0x38   :  { %339 = shalt.err (!%p336_p12)
}
  0x39   :  { %53 = dma.hbm_to_vmem [thread:$0]  %s545_s4, 128, %s51_s27, [#allocation8]  }
  0x3a   :  { %362 = dma.done.wait [#allocation5], 16  }
  0x3b   :  { %363 = vsyncadd [#allocation5], 4294967280 }
  0x3c   :  { %364 = dma.done.wait [#allocation3], 128  }
  0x3d   :  { %365 = vsyncadd [#allocation3], 4294967168 }
  0x3e   :  { %366 = dma.done.wait [#allocation8], 256  }
  0x3f   :  { %367 = vsyncadd [#allocation8], 4294967040 }
  0x40   :  { %66 = sfence }
  0x41   :  { %v70_v0 = vld [vmem:[#allocation6] sm:$0xff]  ;;  %v374_v1 = vmov 1   ;;  %v375_v2 = vmov 0   ;;  %v376_v3 = vmov 5   ;;  %v377_v4 = vmov 4   ;;  %v463_v11 = vld [vmem:[#allocation7] sm:$0xff] }
  0x42   :  { %249 = vset.pattern.permute.xlu1 %v374_v1  ;;  %247 = vset.pattern.permute.xlu0 %v375_v2  ;;  %v378_v5 = vmov 2   ;;  %v379_v6 = vmov 6   ;;  %v380_v7 = vmov 3   ;;  %v381_v8 = vmov 8   ;;  %v468_v12 = vld [vmem:[%s544_s3] sm:$0xff]  ;;  %v470_v13 = vld [vmem:[#allocation9] sm:$0xff] }
  0x43   :  { %126 = vperm.xlu1 %249, %v70_v0   ;;  %106 = vperm.xlu0 %247, %v70_v0   ;;  %v382_v9 = vmov 7   ;;  %v383_v10 = vmov 9   ;;  %vm78_vm0 = vcmask 1041408   ;;  %v72_v15 = vrot.slane %v463_v11, 6  ;;  %s201_s3 = sld [smem:[#allocation2]]  ;;  %s230_s12 = sld [smem:[#allocation2 + $0x1]] }
  0x44   :  { %v76_v16 = vrot.slane %v463_v11, 2  ;;  %v85_v18 = vrot.slane %v468_v12, 6  ;;  %v89_v19 = vrot.slane %v468_v12, 2  ;;  %v95_v20 = vrot.slane %v470_v13, 6  ;;  %s231_s13 = sld [smem:[#allocation2 + $0x2]]  ;;  %s384_s14 = smov [#allocation10]  }
  0x45   :  { %v99_v21 = vrot.slane %v470_v13, 2  ;;  %vm80_vm1 = vcmask 1043456   ;;  %v74_v22 = vrot.slane %v463_v11, 4  ;;  %v79_v24 = vsel %vm78_vm0, %v463_v11, %v72_v15  ;;  %s219_s15 = sshll.u32 %s384_s14, 4  ;;  %s220_s15 = int_to_ptr.vmem [resolvable:$true] %s219_s15 }
  0x46   :  { %v116_v23 = vsel %vm78_vm0, %v76_v16, %v463_v11  ;;  %v87_v26 = vrot.slane %v468_v12, 4  ;;  %v97_v27 = vrot.slane %v470_v13, 4  ;;  %v119_v28 = vsel %vm78_vm0, %v89_v19, %v468_v12  ;;  %s340_s16 = scalar_lea.vmem %s220_s15, 128  ;;  %p345_p0 = scmp.lt.s32.totalorder %s220_s15, %s220_s15 }
  0x47   :  { %250 = vset.pattern.permute.xlu1 %v376_v3  ;;  %248 = vset.pattern.permute.xlu0 %v377_v4  ;;  %v122_v29 = vsel %vm78_vm0, %v99_v21, %v470_v13  ;;  %v91_v30 = vsel %vm78_vm0, %v468_v12, %v85_v18  ;;  %v101_v31 = vsel %vm78_vm0, %v470_v13, %v95_v20  ;;  %vm82_vm2 = vcmask 1045504   ;;  %p341_p13 = scmp.ne.s32.totalorder %s220_s15, %s340_s16  ;;  %p346_p1 = scmp.lt.s32.totalorder %s340_s16, %s340_s16 }
  0x48   :  { %132 = vperm.xlu1 %250, %v70_v0   ;;  %111 = vperm.xlu0 %248, %v70_v0   ;;  %v139_v32 = vsel %vm78_vm0, %v74_v22, %v76_v16  ;;  %v142_v33 = vsel %vm78_vm0, %v87_v26, %v89_v19  ;;  %v145_v34 = vsel %vm78_vm0, %v97_v27, %v99_v21 }
  0x49   :  { %v117_v35 = vsel %vm80_vm1, %v116_v23, %v72_v15  ;;  %v81_v36 = vsel %vm80_vm1, %v79_v24, %v74_v22  ;;  %v120_v38 = vsel %vm80_vm1, %v119_v28, %v85_v18  ;;  %v123_v39 = vsel %vm80_vm1, %v122_v29, %v95_v20  ;;  %p347_p2 = por %p346_p1, %p345_p0 }
  0x4a   :  { %v92_v40 = vsel %vm80_vm1, %v91_v30, %v87_v26  ;;  %v102_v41 = vsel %vm80_vm1, %v101_v31, %v97_v27  ;;  %v140_v43 = vsel %vm80_vm1, %v139_v32, %v463_v11  ;;  %v143_v44 = vsel %vm80_vm1, %v142_v33, %v468_v12 }
  0x4b   :  { %v146_v45 = vsel %vm80_vm1, %v145_v34, %v470_v13  ;;  %v162_v46 = vsel %vm78_vm0, %v72_v15, %v74_v22  ;;  %v118_v47 = vsel %vm82_vm2, %v117_v35, %v74_v22  ;;  %v83_v48 = vsel %vm82_vm2, %v81_v36, %v76_v16  ;;  %p348_p3 = pnand %p347_p2, %p341_p13 }
  0x4c   :  { %251 = vset.pattern.permute.xlu1 %v378_v5  ;;  %252 = vset.pattern.permute.xlu0 %v379_v6  ;;  %v165_v49 = vsel %vm78_vm0, %v85_v18, %v87_v26  ;;  %v168_v50 = vsel %vm78_vm0, %v95_v20, %v97_v27  ;;  %v121_v51 = vsel %vm82_vm2, %v120_v38, %v87_v26  ;;  %v205_v33 = vstv %s230_s12 }
  0x4d   :  { %149 = vperm.xlu1 %251, %v70_v0   ;;  %155 = vperm.xlu0 %252, %v70_v0   ;;  %v124_v52 = vsel %vm82_vm2, %v123_v39, %v97_v27  ;;  %v93_v53 = vsel %vm82_vm2, %v92_v40, %v89_v19  ;;  %v103_v54 = vsel %vm82_vm2, %v102_v41, %v99_v21 }
  0x4e   :  { %v141_v55 = vsel %vm82_vm2, %v140_v43, %v72_v15  ;;  %v144_v56 = vsel %vm82_vm2, %v143_v44, %v85_v18  ;;  %v147_v57 = vsel %vm82_vm2, %v146_v45, %v95_v20  ;;  %v163_v58 = vsel %vm80_vm1, %v162_v46, %v76_v16 }
  0x4f   :  { %v166_v62 = vsel %vm80_vm1, %v165_v49, %v89_v19  ;;  %v169_v63 = vsel %vm80_vm1, %v168_v50, %v99_v21  ;;  %v164_v6 = vsel %vm82_vm2, %v163_v58, %v463_v11 }
  0x51   :  { %253 = vset.pattern.permute.xlu1 %v380_v7  ;;  %255 = vset.pattern.permute.xlu0 %v381_v8 }
  0x52   :  { %172 = vperm.xlu1 %253, %v70_v0   ;;  %187 = vperm.xlu0 %255, %v70_v0  }
  0x56   :  { %254 = vset.pattern.permute.xlu1 %v382_v9  ;;  %257 = vset.pattern.permute.xlu0 %v383_v10 }
  0x57   :  { %178 = vperm.xlu1 %254, %v70_v0  }
  0x5b   :  { %256 = vset.pattern.permute.xlu1 %v383_v10  ;;  %v167_v10 = vsel %vm82_vm2, %v166_v62, %v468_v12 }
  0x5c   :  { %193 = vperm.xlu1 %256, %v70_v0  }
  0xc2   :  { %v127_v14 = vpop.permute.xlu1 %126  ;;  %v107_v17 = vpop.permute.xlu0 %106 }
  0xc3   :  { %v129_v59 = vmul.f32 %v127_v14, %v118_v47  ;;  %v109_v60 = vmul.f32 %v107_v17, %v83_v48  ;;  %v170_v14 = vsel %vm82_vm2, %v169_v63, %v470_v13  ;;  %v202_v13 = vstv %s201_s3 }
  0xc5   :  { %v130_v9 = vadd.f32 %v129_v59, %v109_v60 }
  0xc7   :  { %v133_v25 = vpop.permute.xlu1 %132  ;;  %v112_v37 = vpop.permute.xlu0 %111 }
  0xc8   :  { %v135_v0 = vmul.f32 %v133_v25, %v121_v51  ;;  %v137_v1 = vmul.f32 %v133_v25, %v124_v52  ;;  %v114_v2 = vmul.f32 %v112_v37, %v93_v53  ;;  %v115_v3 = vmul.f32 %v112_v37, %v103_v54 }
  0xc9   :  { %v209_v37 = vstv %s231_s13 }
  0xca   :  { %v136_v15 = vadd.f32 %v135_v0, %v114_v2  ;;  %v138_v16 = vadd.f32 %v137_v1, %v115_v3 }
  0xcc   :  { %v150_v42 = vpop.permute.xlu1 %149  ;;  %v156_v61 = vpop.permute.xlu0 %155 }
  0xcd   :  { %v152_v5 = vmul.f32 %v150_v42, %v141_v55  ;;  %v158_v7 = vmul.f32 %v156_v61, %v144_v56  ;;  %v160_v8 = vmul.f32 %v156_v61, %v147_v57 }
  0xcf   :  { %v153_v18 = vadd.f32 %v152_v5, %v130_v9  ;;  %v159_v20 = vadd.f32 %v158_v7, %v136_v15  ;;  %v161_v21 = vadd.f32 %v160_v8, %v138_v16 }
  0xd1   :  { %v173_v4 = vpop.permute.xlu1 %172  ;;  %v188_v26 = vpop.permute.xlu0 %187 }
  0xd2   :  { %v175_v17 = vmul.f32 %v173_v4, %v164_v6 }
  0xd4   :  { %v176_v24 = vadd.f32 %v175_v17, %v153_v18 }
  0xd6   :  { %v179_v19 = vpop.permute.xlu1 %178 }
  0xd7   :  { %v181_v22 = vmul.f32 %v179_v19, %v167_v10  ;;  %v183_v23 = vmul.f32 %v179_v19, %v170_v14 }
  0xd9   :  { %v182_v11 = vadd.f32 %v181_v22, %v159_v20  ;;  %v184_v25 = vadd.f32 %v183_v23, %v161_v21 }
  0xdb   :  { %v194_v27 = vpop.permute.xlu1 %193  ;;  %v185_v28 = vadd.f32 %v182_v11, %v176_v24  ;;  %v198_v29 = vadd.f32 %v184_v25, %v176_v24 }
  0xdd   :  { %v196_v12 = vadd.f32 %v194_v27, %v185_v28  ;;  %v199_v30 = vadd.f32 %v198_v29, %v194_v27  ;;  %v190_v31 = vadd.f32 %v188_v26, %v185_v28 }
  0xdf   :  { %258 = vtanh.f32 %v196_v12 }
  0xe0   :  { %260 = vtanh.f32 %v199_v30 }
  0xe1   :  { %262 = vtanh.f32 %v190_v31 }
  0xe9   :  { %v259_v32 = vpop.eup %258 }
  0xea   :  { %v261_v34 = vpop.eup %260  ;;  %v210_v40 = vmul.f32 %v259_v32, %v209_v37 }
  0xeb   :  { %v263_v35 = vpop.eup %262  ;;  %v203_v36 = vmul.f32 %v261_v34, %v202_v13 }
  0xec   :  { %v206_v38 = vmul.f32 %v263_v35, %v205_v33 }
  0xee   :  { %v207_v39 = vadd.f32 %v206_v38, %v203_v36 }
  0xf0   :  { %v211_v41 = vadd.f32 %v210_v40, %v207_v39 }
  0xf2   :  { %212 = vst [vmem:[#allocation10] sm:$0xff] %v211_v41 }
  0xf3   :  { %351 = shalt.err (!%p348_p3)
}
  0xf4   :  { %s352_s18 = scalar_lea.hbm %s546_s5, 128 }
  0xf5   :  { %p353_p4 = scmp.ne.s32.totalorder %s546_s5, %s352_s18  ;;  %p356_p5 = scmp.lt.u32.totalorder %s352_s18, %s546_s5 }
  0xf7   :  { %p358_p6 = pnand %p356_p5, %p353_p4 }
  0xf9   :  { %361 = shalt.err (!%p358_p6)
}
  0xfa   :  { %222 = dma.vmem_to_hbm [thread:$0]  %s220_s15, 128, %s546_s5, [#allocation4]  }
  0xfb   :  { %368 = dma.done.wait [#allocation4], 128  }
  0xfc   :  { %369 = vsyncadd [#allocation4], 4294967168 }
  0xfd   :  { %226 = vsyncpa [#allocation3], 1 }
  0xfe   :  { %227 = vsyncpa [#allocation8], 1 }
  0xff   :  { %228 = vsyncpa [#allocation4], 1 }
 0x100   :  { %229 = vsyncpa [#allocation5], 1 }

</bundles_post_ra>
